<compile_context>
chip_gen: v7x
topology: tpu7x:2x2x1
jax: 0.10.0
libtpu: 0.0.40
codegen_flags: <defaults>
</compile_context>

<pallas_src>
import functools

import jax
import jax.numpy as jnp
from jax.experimental import pallas as pl
from jax.experimental.pallas import tpu as pltpu


_LANE = 1024          # lane width of the flattened view (multiple of 128)
_MAX_ROWS = 256       # rows per block -> up to 256*1024*4B = 1 MiB f32 blocks


def _cdiv(a, b):
    return -(-a // b)


def _round_up(a, m):
    return _cdiv(a, m) * m


def _mse_partial_kernel(yhat_ref, y_ref, out_ref, acc_ref, *, inv_n):
    i = pl.program_id(1)

    # Init this core's accumulator on its first block.
    @pl.when(i == 0)
    def _():
        acc_ref[...] = jnp.zeros_like(acc_ref)

    # Hot path: elementwise squared error accumulated in f32 (VPU-only,
    # no per-step cross-lane reduction).
    d = yhat_ref[...].astype(jnp.float32) - y_ref[...].astype(jnp.float32)
    acc_ref[...] += d * d

    # Finalize this core's chunk: one cross-lane reduce, scaled by 1/N,
    # written as a lane-dense (8,128) block (wrapper reads element [0,0]).
    @pl.when(i == pl.num_programs(1) - 1)
    def _():
        s = jnp.sum(acc_ref[...], keepdims=True) * inv_n       # (1, 1)
        out_ref[...] = jnp.broadcast_to(s, out_ref.shape)


def mse_kl_loss(yhat, y, mu, logvar, *, beta=0.0001, num_cores=2):
    """Pallas implementation of MseKlLoss.forward. Returns a scalar f32."""
    assert yhat.shape == y.shape
    assert mu.shape == logvar.shape

    n_elems = yhat.size
    flat_yhat = yhat.reshape(-1)
    flat_y = y.reshape(-1)

    # Dense (rows, _LANE) view of the flat buffer; pad the tail with zeros
    # (zero diff -> zero contribution to the sum), so any shape works and the
    # tile size is always the bandwidth-friendly one.
    rows = _cdiv(n_elems, _LANE)
    row_tile = min(_MAX_ROWS, _round_up(_cdiv(rows, num_cores), 8))
    blocks_per_core = max(1, _cdiv(rows, row_tile * num_cores))
    rows_pad = blocks_per_core * num_cores * row_tile
    pad = rows_pad * _LANE - n_elems
    if pad > 0:
        flat_yhat = jnp.pad(flat_yhat, (0, pad))
        flat_y = jnp.pad(flat_y, (0, pad))
    yhat2 = flat_yhat.reshape(rows_pad, _LANE)
    y2 = flat_y.reshape(rows_pad, _LANE)

    kernel = functools.partial(_mse_partial_kernel, inv_n=1.0 / float(n_elems))

    def in_map(o, i):
        return (o * blocks_per_core + i, 0)

    partials = pl.pallas_call(
        kernel,
        out_shape=jax.ShapeDtypeStruct((num_cores * 8, 128), jnp.float32),
        grid_spec=pltpu.PrefetchScalarGridSpec(
            num_scalar_prefetch=0,
            grid=(num_cores, blocks_per_core),
            in_specs=[
                pl.BlockSpec((row_tile, _LANE), in_map),   # yhat
                pl.BlockSpec((row_tile, _LANE), in_map),   # y
            ],
            out_specs=pl.BlockSpec((8, 128), lambda o, i: (o, 0)),
            scratch_shapes=[pltpu.VMEM((row_tile, _LANE), jnp.float32)],
        ),
        compiler_params=pltpu.CompilerParams(
            dimension_semantics=("parallel", "arbitrary"),
            vmem_limit_bytes=32 * 1024 * 1024,
        ),
    )(yhat2, y2)

    # Per-core scaled partial MSE sums live at [o*8, 0]; combine them.
    mse = jnp.sum(partials.reshape(num_cores, 8, 128)[:, 0, 0])

    # KL term: tiny (B x Z) latent math computed outside the bandwidth-bound
    # pipeline (per perf review).  0.5*sum(std^2 + mu^2 - 1 - log(std^2)) with
    # std = exp(logvar/2) simplifies to the numerically-stable form below.
    mu_f = mu.astype(jnp.float32)
    lv_f = logvar.astype(jnp.float32)
    kl = 0.5 * jnp.sum(jnp.exp(lv_f) + mu_f * mu_f - 1.0 - lv_f)

    return mse + beta * kl


def _reference(yhat, y, mu, logvar, beta=0.0001):
    mse = jnp.mean((yhat.astype(jnp.float32) - y.astype(jnp.float32)) ** 2)
    std = jnp.exp(logvar.astype(jnp.float32) / 2)
    kl = 0.5 * jnp.sum(std**2 + mu.astype(jnp.float32) ** 2 - 1
                       - jnp.log(std**2))
    return mse + beta * kl


if __name__ == "__main__":
    key = jax.random.PRNGKey(0)
    k1, k2, k3, k4 = jax.random.split(key, 4)

    # Reconstruction tensors (e.g. VAE decoder output), NCHW-like.
    yhat = jax.random.normal(k1, (2, 4, 16, 16), dtype=jnp.float32)
    y = jax.random.normal(k2, (2, 4, 16, 16), dtype=jnp.float32)
    # Latent statistics.
    mu = jax.random.normal(k3, (2, 32), dtype=jnp.float32)
    logvar = 0.1 * jax.random.normal(k4, (2, 32), dtype=jnp.float32)

    loss = jax.block_until_ready(mse_kl_loss(yhat, y, mu, logvar, beta=0.0001))
    ref = _reference(yhat, y, mu, logvar, beta=0.0001)

    assert jnp.allclose(loss, ref, rtol=1e-5, atol=1e-5), (loss, ref)
    print("KERNEL_OK")
</pallas_src>

<mosaic_0001>
module attributes {stable_mosaic.version = 11 : i64} {
  func.func @_mse_partial_kernel(%arg0: i32, %arg1: i32, %arg2: memref<8x1024xf32, #tpu.memory_space<vmem>>, %arg3: memref<8x1024xf32, #tpu.memory_space<vmem>>, %arg4: memref<8x128xf32, #tpu.memory_space<vmem>>, %arg5: memref<8x1024xf32, #tpu.memory_space<vmem>>) attributes {dimension_semantics = [#tpu.dimension_semantics<parallel>, #tpu.dimension_semantics<arbitrary>], iteration_bounds = array<i64: 2, 1>, scalar_prefetch = 0 : i64, scratch_operands = 1 : i64, tpu.core_type = #tpu.core_type<tc>, window_params = [{transform_indices = @transform_0, window_bounds = array<i64: 8, 1024>}, {transform_indices = @transform_1, window_bounds = array<i64: 8, 1024>}, {transform_indices = @transform_2, window_bounds = array<i64: 8, 128>}]} {
    %c0_i32 = arith.constant 0 : i32
    %0 = arith.cmpi eq, %arg1, %c0_i32 : i32
    %1 = arith.extui %0 : i1 to i32
    %c0_i32_0 = arith.constant 0 : i32
    %2 = arith.cmpi ne, %1, %c0_i32_0 : i32
    scf.if %2 {
      %cst = arith.constant 0.000000e+00 : f32
      %13 = vector.broadcast %cst : f32 to vector<8x1024xf32>
      %c0_10 = arith.constant 0 : index
      %c0_11 = arith.constant 0 : index
      %14 = vector.load %arg5[%c0_10, %c0_11] : memref<8x1024xf32, #tpu.memory_space<vmem>>, vector<8x1024xf32>
      tpu.vector_store %arg5[%c0_10, %c0_11], %13 {strides = array<i32>} : memref<8x1024xf32, #tpu.memory_space<vmem>>, vector<8x1024xf32>,
    } else {
    }
    %c0 = arith.constant 0 : index
    %c0_1 = arith.constant 0 : index
    %3 = vector.load %arg2[%c0, %c0_1] : memref<8x1024xf32, #tpu.memory_space<vmem>>, vector<8x1024xf32>
    %c0_2 = arith.constant 0 : index
    %c0_3 = arith.constant 0 : index
    %4 = vector.load %arg3[%c0_2, %c0_3] : memref<8x1024xf32, #tpu.memory_space<vmem>>, vector<8x1024xf32>
    %5 = arith.subf %3, %4 : vector<8x1024xf32>
    %c0_4 = arith.constant 0 : index
    %c0_5 = arith.constant 0 : index
    %6 = vector.load %arg5[%c0_4, %c0_5] : memref<8x1024xf32, #tpu.memory_space<vmem>>, vector<8x1024xf32>
    %7 = arith.mulf %5, %5 : vector<8x1024xf32>
    %8 = arith.addf %6, %7 : vector<8x1024xf32>
    %c0_6 = arith.constant 0 : index
    %c0_7 = arith.constant 0 : index
    %9 = vector.load %arg5[%c0_6, %c0_7] : memref<8x1024xf32, #tpu.memory_space<vmem>>, vector<8x1024xf32>
    tpu.vector_store %arg5[%c0_6, %c0_7], %8 {strides = array<i32>} : memref<8x1024xf32, #tpu.memory_space<vmem>>, vector<8x1024xf32>,
    %c0_i32_8 = arith.constant 0 : i32
    %10 = arith.cmpi eq, %arg1, %c0_i32_8 : i32
    %11 = arith.extui %10 : i1 to i32
    %c0_i32_9 = arith.constant 0 : i32
    %12 = arith.cmpi ne, %11, %c0_i32_9 : i32
    scf.if %12 {
      %c0_10 = arith.constant 0 : index
      %c0_11 = arith.constant 0 : index
      %13 = vector.load %arg5[%c0_10, %c0_11] : memref<8x1024xf32, #tpu.memory_space<vmem>>, vector<8x1024xf32>
      %14 = vector.shape_cast %13 : vector<8x1024xf32> to vector<1x8x1024xf32>
      %cst = arith.constant dense<0.000000e+00> : vector<1xf32>
      %15 = vector.multi_reduction <add>, %14, %cst [1, 2] : vector<1x8x1024xf32> to vector<1xf32>
      %16 = vector.shape_cast %15 : vector<1xf32> to vector<1x1x1xf32>
      %17 = vector.extract %16[0, 0, 0] : f32 from vector<1x1x1xf32>
      %18 = vector.broadcast %17 : f32 to vector<1x1xf32>
      %cst_12 = arith.constant 4.8828125E-4 : f32
      %19 = vector.broadcast %cst_12 : f32 to vector<1x1xf32>
      %20 = arith.mulf %18, %19 : vector<1x1xf32>
      %21 = vector.shape_cast %20 : vector<1x1xf32> to vector<1x1xf32>
      %22 = vector.broadcast %21 : vector<1x1xf32> to vector<8x128xf32>
      %c0_13 = arith.constant 0 : index
      %c0_14 = arith.constant 0 : index
      %23 = vector.load %arg4[%c0_13, %c0_14] : memref<8x128xf32, #tpu.memory_space<vmem>>, vector<8x128xf32>
      tpu.vector_store %arg4[%c0_13, %c0_14], %22 {strides = array<i32>} : memref<8x128xf32, #tpu.memory_space<vmem>>, vector<8x128xf32>,
    } else {
    }
    return
  }
  func.func @transform_0(%arg0: i32, %arg1: i32) -> (i32, i32) {
    %c1_i32 = arith.constant 1 : i32
    %0 = arith.muli %arg0, %c1_i32 : i32
    %1 = arith.addi %0, %arg1 : i32
    %c0_i32 = arith.constant 0 : i32
    %c0_i32_0 = arith.constant 0 : i32
    return %1, %c0_i32 : i32, i32
  }
  func.func @transform_1(%arg0: i32, %arg1: i32) -> (i32, i32) {
    %c1_i32 = arith.constant 1 : i32
    %0 = arith.muli %arg0, %c1_i32 : i32
    %1 = arith.addi %0, %arg1 : i32
    %c0_i32 = arith.constant 0 : i32
    %c0_i32_0 = arith.constant 0 : i32
    return %1, %c0_i32 : i32, i32
  }
  func.func @transform_2(%arg0: i32, %arg1: i32) -> (i32, i32) {
    %c0_i32 = arith.constant 0 : i32
    %c0_i32_0 = arith.constant 0 : i32
    return %arg0, %c0_i32 : i32, i32
  }
}

</mosaic_0001>

<bundles_post_ra>
// kernel: tpu_custom_call.1
= control target key start
LH: loop header
LB: loop body
LE: loop exit
PB: predicated region body
PF: predicated region fallthrough
CT: control target
= control target key end

     0   :  { %7 = vsyncpa [#allocation4], 0  ;;  %s919_s0 = inlined_call_operand.hbm [shape: f32[16,1024], index: 0, kind: input, shape index: {}]   ;;  %s920_s1 = inlined_call_operand.hbm [shape: f32[16,1024], index: 1, kind: input, shape index: {}]   ;;  %s921_s2 = inlined_call_operand.hbm [shape: f32[16,128], index: 2, kind: output, shape index: {}]  }
   0x1   :  { %9 = vsyncpa [#allocation4 + $0x1], 0 }
   0x2   :  { %10 = vsyncpa [#allocation7], 0 }
   0x3   :  { %12 = vsyncpa [#allocation7 + $0x1], 0 }
   0x4   :  { %13 = vsyncpa [#allocation5], 0 }
   0x5   :  { %15 = vsyncpa [#allocation5 + $0x1], 0  ;;  %s688_s9 = smov 0   ;;  %s690_s10 = smov 0  }
   0x6   :  { %s692_s11 = smov 0   ;;  %s694_s12 = smov 0  }
   0x7   :  { %s696_s13 = smov 0   ;;  %s698_s14 = smov 0  }
   0x8 LB: > { %s433_s15 = sadd.s32 4294967295, %s668_s14   ;;  %s434_s16 = sadd.s32 4294967294, %s668_s14   ;;  %s668_s14 = sphi %s698_s14, %s21_s14   ;;  %s664_s13 = sphi %s696_s13, %s941_s13   ;;  %s660_s12 = sphi %s694_s12, %s940_s12   ;;  %s656_s11 = sphi %s692_s11, %s939_s11   ;;  %s652_s10 = sphi %s690_s10, %s938_s10   ;;  %s648_s9 = sphi %s688_s9, %s937_s9  }
   0x9   : > { %s33_s17 = sadd.s32 1, %s664_s13  ;;  %s42_s18 = sadd.s32 1, %s656_s11 }
   0xa   : > { %p35_p0 = scmp.ge.s32.totalorder %s33_s17, 2  ;;  %p49_p1 = scmp.ne.s32.totalorder %s656_s11, %s652_s10 }
   0xb   : > { %p50_p2 = scmp.eq.s32.totalorder %s668_s14, 0  ;;  %p55_p3 = scmp.ne.s32.totalorder %s652_s10, %s648_s9 }
   0xc   : > { %s943_s17 = smov (%p35_p0, %s33_s17), 0  ;;  %p56_p5 = scmp.eq.s32.totalorder %s433_s15, 0 }
   0xd   : > { %p729_p4 = por %p50_p2, %p49_p1  ;;  %s39_s20 = ssub.s32 %s664_s13, %s943_s17 }
   0xe   : > { %p107_p6 = scmp.eq.s32.totalorder %s433_s15, 1  ;;  %p40_p7 = scmp.eq.s32.totalorder %s39_s20, 0 }
   0xf   : > { %p735_p8 = por %p56_p5, %p55_p3  ;;  %p113_p10 = scmp.eq.s32.totalorder %s434_s16, 1 }
  0x10   : > { %p739_p9 = por %p107_p6, %p49_p1  ;;  %p472_p13 = scmp.lt.s32.totalorder %s668_s14, 2 }
  0x11   : > { %s925_s21 = scalar_select %p735_p8, 1, 0 }
  0x12   : > { %s926_s22 = scalar_select %p739_p9, 1, 0 }
  0x13   : > { %s744_s23 = scalar_select %p40_p7, %s656_s11, %s42_s18  }
  0x14   : > { %p746_p11 = por %p113_p10, %p55_p3  ;;  %s753_s25 = sand.u32 1, %s656_s11  }
  0x15   : > { %s437_s26 = sshll.u32 %s753_s25, 6  ;;  %s451_s27 = sshll.u32 %s664_s13, 10 }
  0x16   : > { %s927_s24 = scalar_select %p746_p11, 1, 0 }
  0x17   : > { %s762_s30 = scalar_lea.hbm %s919_s0, %s451_s27  ;;  %s137_s3 = scalar_lea.vmem [#allocation3], %s437_s26 }
  0x18   : > { %s146_s4 = sshll.u32 %s137_s3, 4  ;;  %p770_p0 = pnand %p472_p13, %p729_p4  ;;  %s766_s4 = int_to_ptr.vmem [resolvable:$true] %s146_s4 }
  0x19   : > { %s134_s6 = scalar_lea.sflag [#allocation4], %s753_s25  ;;  %s522_s7 = scalar_lea.hbm %s762_s30, 1024 }
  0x1a   : > { %p523_p3 = scmp.ne.s32.totalorder %s762_s30, %s522_s7  ;;  %p524_p5 = pneg %p770_p0 }
  0x1b   : > { %s527_s16 = scalar_lea.hbm %s919_s0, 2048  ;;  %p528_p4 = scmp.lt.u32.totalorder %s762_s30, %s919_s0 }
  0x1c   : > { %p525_p6 = pnand %p524_p5, %p523_p3  ;;  %p529_p10 = scmp.lt.u32.totalorder %s527_s16, %s522_s7 }
  0x1d   : > { %p531_p12 = scmp.lt.u32.totalorder %s522_s7, %s762_s30 }
  0x1e   : > { %p526_p7 = pneg %p525_p6  ;;  %p530_p13 = por %p529_p10, %p528_p4 }
  0x20   : > { %p532_p1 = por %p531_p12, %p530_p13 }
  0x22   : > { %p533_p2 = pnand %p532_p1, %p526_p7 }
  0x24   : > { %536 = shalt.err (!%p533_p2)
}
  0x25   : > { %s537_s20 = scalar_lea.vmem %s766_s4, 1024  ;;  %s670_s28 = smov [#allocation3]  }
  0x26   : > { %p538_p3 = scmp.ne.s32.totalorder %s766_s4, %s537_s20  ;;  %s542_s29 = sshll.u32 %s670_s28, 4  ;;  %s543_s29 = int_to_ptr.vmem [resolvable:$false] %s542_s29 }
  0x27   : > { %s544_s3 = scalar_lea.vmem %s543_s29, 2048  ;;  %p545_p9 = scmp.lt.s32.totalorder %s766_s4, %s543_s29 }
  0x28   : > { %p540_p6 = pnand %p538_p3, %p524_p5  ;;  %p546_p4 = scmp.lt.s32.totalorder %s544_s3, %s537_s20 }
  0x2a   : > { %p541_p11 = pneg %p540_p6  ;;  %p547_p10 = por %p546_p4, %p545_p9 }
  0x2c   : > { %p548_p12 = pnand %p547_p10, %p541_p11 }
  0x2e   : > { %551 = shalt.err (!%p548_p12)
}
  0x2f   : > { %464 = dma.hbm_to_vmem [thread:$0]  (!%p770_p0), %s762_s30, 1024, %s766_s4, %s134_s6  }
  0x30   : > { %p929_p1 = scmp.lt.s32.totalorder %s668_s14, 3  ;;  %p930_p2 = scmp.ge.s32.totalorder %s668_s14, 1 }
  0x31   : > { %s815_s16 = scalar_lea.hbm %s920_s1, %s451_s27  ;;  %s157_s18 = scalar_lea.vmem [#allocation6], %s437_s26 }
  0x32   : > { %p806_p7 = pnand %p930_p2, %p929_p1  ;;  %s166_s19 = sshll.u32 %s157_s18, 4  ;;  %s167_s19 = int_to_ptr.vmem [resolvable:$true] %s166_s19 }
  0x33   : > { %s154_s30 = scalar_lea.sflag [#allocation7], %s753_s25  ;;  %s552_s4 = scalar_lea.hbm %s815_s16, 1024 }
  0x34   : > { %s931_s7 = scalar_select %p806_p7, 1, 0 }
  0x35   : > { %p553_p9 = scmp.ne.s32.totalorder %s815_s16, %s552_s4  ;;  %s557_s27 = scalar_lea.hbm %s920_s1, 2048 }
  0x36   : > { %p558_p3 = scmp.lt.u32.totalorder %s815_s16, %s920_s1  ;;  %p559_p6 = scmp.lt.u32.totalorder %s557_s27, %s552_s4 }
  0x37   : > { %p555_p11 = pnand %p553_p9, %p524_p5  ;;  %p561_p10 = scmp.lt.u32.totalorder %s552_s4, %s815_s16 }
  0x38   : > { %p560_p4 = por %p559_p6, %p558_p3 }
  0x39   : > { %p556_p13 = pneg %p555_p11 }
  0x3a   : > { %p562_p12 = por %p561_p10, %p560_p4 }
  0x3c   : > { %p563_p1 = pnand %p562_p12, %p556_p13 }
  0x3e   : > { %566 = shalt.err (!%p563_p1)
}
  0x3f   : > { %s567_s25 = scalar_lea.vmem %s167_s19, 1024  ;;  %s671_s26 = smov [#allocation6]  }
  0x40   : > { %p568_p2 = scmp.ne.s32.totalorder %s167_s19, %s567_s25  ;;  %s572_s3 = sshll.u32 %s671_s26, 4  ;;  %s573_s3 = int_to_ptr.vmem [resolvable:$false] %s572_s3 }
  0x41   : > { %s574_s8 = scalar_lea.vmem %s573_s3, 2048  ;;  %p575_p8 = scmp.lt.s32.totalorder %s167_s19, %s573_s3 }
  0x42   : > { %p570_p9 = pnand %p568_p2, %p524_p5  ;;  %p576_p7 = scmp.lt.s32.totalorder %s574_s8, %s567_s25 }
  0x44   : > { %p571_p11 = pneg %p570_p9  ;;  %p577_p3 = por %p576_p7, %p575_p8 }
  0x46   : > { %p578_p6 = pnand %p577_p3, %p571_p11 }
  0x48   : > { %581 = shalt.err (!%p578_p6)
}
  0x49   : > { %467 = dma.hbm_to_vmem [thread:$0]  (!%p770_p0), %s815_s16, 1024, %s167_s19, %s154_s30  }
  0x4a   : > { %p932_p13 = scmp.ne.s32.totalorder %s931_s7, 0 }
  0x4b   : > { %s842_s15 = sand.u32 (!%p932_p13), 1, %s652_s10   ;;  %p933_p8 = scmp.ne.s32.totalorder (!%p932_p13), %s925_s21, 0 }
  0x4c   : > { %175 = sbr.rel (%p932_p13) target bundleno = 328 (0x148), region = 28  ;;  %s444_s18 = sshll.u32 (!%p932_p13), %s842_s15, 6 }
  0x4d   : > { %s178_s4 = scalar_lea.sflag (!%p932_p13), [#allocation4], %s842_s15  ;;  %s846_s6 = scalar_lea.vmem (!%p932_p13), [#allocation3], %s444_s18 }
  0x53   : > { %635 = dma.done.wait (%p933_p8), %s178_s4, 1024  }
  0x54   : > { %637 = vsyncadd (%p933_p8), %s178_s4, 4294966272  ;;  %s187_s5 = scalar_lea.sflag [#allocation7], %s842_s15  ;;  %s190_s7 = scalar_lea.vmem [#allocation6], %s444_s18 }
  0x55   : > { %639 = dma.done.wait (%p933_p8), %s187_s5, 1024  }
  0x56   : > { %641 = vsyncadd (%p933_p8), %s187_s5, 4294966272  ;;  %v230_v0 = vld [vmem:[%s846_s6] sm:$0xff]  ;;  %v231_v1 = vld [vmem:[%s846_s6 + $0x8] sm:$0xff]  ;;  %s446_s21 = sshll.u32 %s842_s15, 3  ;;  %s448_s16 = sshll.u32 %s660_s12, 7 }
  0x57   : > { %v232_v2 = vld [vmem:[%s846_s6 + $0x10] sm:$0xff]  ;;  %v233_v3 = vld [vmem:[%s846_s6 + $0x18] sm:$0xff]  ;;  %v234_v4 = vld [vmem:[%s846_s6 + $0x20] sm:$0xff]  ;;  %s215_s19 = scalar_lea.vmem [#allocation8], %s446_s21  ;;  %s870_s29 = scalar_lea.hbm %s921_s2, %s448_s16 }
  0x58   : > { %v238_v5 = vld [vmem:[%s190_s7] sm:$0xff]  ;;  %v239_v6 = vld [vmem:[%s190_s7 + $0x8] sm:$0xff]  ;;  %v240_v7 = vld [vmem:[%s190_s7 + $0x10] sm:$0xff]  ;;  %s330_s30 = sshll.u32 %s215_s19, 4  ;;  %s317_s25 = scalar_lea.sflag [#allocation5], %s842_s15  ;;  %s872_s30 = int_to_ptr.vmem [resolvable:$true] %s330_s30 }
  0x59   : > { %v241_v8 = vld [vmem:[%s190_s7 + $0x18] sm:$0xff]  ;;  %v246_v9 = vsub.f32 %v230_v0, %v238_v5  ;;  %v242_v10 = vld [vmem:[%s190_s7 + $0x20] sm:$0xff]  ;;  %v247_v11 = vsub.f32 %v231_v1, %v239_v6  ;;  %v248_v12 = vsub.f32 %v232_v2, %v240_v7  ;;  %v235_v14 = vld [vmem:[%s846_s6 + $0x28] sm:$0xff]  ;;  %s582_s26 = scalar_lea.vmem %s872_s30, 128  ;;  %p934_p5 = scmp.ne.s32.totalorder %s926_s22, 0 }
  0x5a   : > { %v249_v13 = vsub.f32 %v233_v3, %v241_v8  ;;  %v243_v15 = vld [vmem:[%s190_s7 + $0x28] sm:$0xff]  ;;  %v250_v17 = vsub.f32 %v234_v4, %v242_v10  ;;  %v236_v20 = vld [vmem:[%s846_s6 + $0x30] sm:$0xff]  ;;  %v237_v25 = vld [vmem:[%s846_s6 + $0x38] sm:$0xff]  ;;  %p583_p0 = scmp.ne.s32.totalorder %s872_s30, %s582_s26  ;;  %s672_s12 = smov [#allocation8]  }
  0x5b   : > { %v262_v16 = vmul.f32 %v246_v9, %v246_v9  ;;  %v263_v18 = vmul.f32 %v247_v11, %v247_v11  ;;  %v264_v19 = vmul.f32 %v248_v12, %v248_v12  ;;  %v244_v21 = vld [vmem:[%s190_s7 + $0x30] sm:$0xff]  ;;  %v251_v22 = vsub.f32 %v235_v14, %v243_v15  ;;  %v245_v26 = vld [vmem:[%s190_s7 + $0x38] sm:$0xff]  ;;  %s586_s3 = sshll.u32 %s672_s12, 4  ;;  %s587_s3 = int_to_ptr.vmem [resolvable:$false] %s586_s3 }
  0x5c   : > { %v265_v23 = vmul.f32 %v249_v13, %v249_v13  ;;  %v252_v27 = vsub.f32 %v236_v20, %v244_v21  ;;  %v266_v28 = vmul.f32 %v250_v17, %v250_v17  ;;  %v253_v30 = vsub.f32 %v237_v25, %v245_v26  ;;  %p584_p7 = pnand %p583_p0, %p934_p5  ;;  %s588_s8 = scalar_lea.vmem %s587_s3, 256 }
  0x5d   : > { %v297_v24 = vadd.f32 %v263_v18, %v262_v16  ;;  %v267_v31 = vmul.f32 %v251_v22, %v251_v22  ;;  %p589_p10 = scmp.lt.s32.totalorder %s872_s30, %s587_s3  ;;  %p590_p12 = scmp.lt.s32.totalorder %s588_s8, %s582_s26 }
  0x5e   : > { %v268_v33 = vmul.f32 %v252_v27, %v252_v27  ;;  %v269_v35 = vmul.f32 %v253_v30, %v253_v30  ;;  %p585_p4 = pneg %p584_p7 }
  0x5f   : > { %v298_v29 = vadd.f32 %v297_v24, %v264_v19  ;;  %p591_p1 = por %p590_p12, %p589_p10 }
  0x61   : > { %v299_v32 = vadd.f32 %v298_v29, %v265_v23  ;;  %p592_p2 = pnand %p591_p1, %p585_p4 }
  0x63   : > { %v300_v34 = vadd.f32 %v299_v32, %v266_v28 }
  0x65   : > { %v301_v36 = vadd.f32 %v300_v34, %v267_v31 }
  0x67   : > { %v302_v37 = vadd.f32 %v301_v36, %v268_v33 }
  0x69   : > { %v303_v38 = vadd.f32 %v302_v37, %v269_v35 }
  0x6b   : > { %304 = vadd.xlane.f32.xlu0 %v303_v38 }
  0xf8   : > { %v305_v39 = vpop.xlane.xlu0 %304 }
  0xf9   : > { %v306_v40 = vrot.slane %v305_v39, 4 }
  0xfb   : > { %v307_v41 = vadd.f32 %v306_v40, %v305_v39 }
  0xfd   : > { %v308_v42 = vrot.slane %v307_v41, 2 }
  0xff   : > { %v309_v43 = vadd.f32 %v308_v42, %v307_v41 }
 0x101   : > { %v310_v44 = vrot.slane %v309_v43, 1 }
 0x103   : > { %v311_v45 = vadd.f32 %v310_v44, %v309_v43 }
 0x105   : > { %453 = vpush %v311_v45 }
 0x136   : > { %s454_s20 = spop %453 }
 0x137   : > { %v313_v46 = vstv %s454_s20 }
 0x138   : > { %v314_v47 = vmul.f32 0.00048828125, %v313_v46 }
 0x13a   : > { %315 = vst [vmem:[%s215_s19] sm:$0xff] %v314_v47 }
 0x13b   : > { %595 = shalt.err (!%p592_p2)
}
 0x13c   : > { %s596_s15 = scalar_lea.hbm %s870_s29, 128  ;;  %s600_s6 = scalar_lea.hbm %s921_s2, 256 }
 0x13d   : > { %p597_p9 = scmp.ne.s32.totalorder %s870_s29, %s596_s15  ;;  %p601_p6 = scmp.lt.u32.totalorder %s870_s29, %s921_s2 }
 0x13e   : > { %p602_p13 = scmp.lt.u32.totalorder %s600_s6, %s596_s15  ;;  %p604_p0 = scmp.lt.u32.totalorder %s596_s15, %s870_s29 }
 0x13f   : > { %p598_p11 = pnand %p597_p9, %p934_p5 }
 0x140   : > { %p603_p8 = por %p602_p13, %p601_p6 }
 0x141   : > { %p599_p3 = pneg %p598_p11 }
 0x142   : > { %p605_p7 = por %p604_p0, %p603_p8 }
 0x144   : > { %p606_p4 = pnand %p605_p7, %p599_p3 }
 0x146   : > { %609 = shalt.err (!%p606_p4)
}
 0x147   : > { %459 = dma.vmem_to_hbm [thread:$0]  (%p934_p5), %s872_s30, 128, %s870_s29, %s317_s25  }
 0x148 PF: > { %s342_s21 = sand.u32 1, %s648_s9   ;;  %p935_p10 = scmp.ne.s32.totalorder %s927_s24, 0 }
 0x149   : > { %p936_p12 = scmp.ge.s32.totalorder %s668_s14, 2  ;;  %s343_s16 = scalar_lea.sflag [#allocation5], %s342_s21 }
 0x14b   : > { %p469_p1 = pnand %p936_p12, %p935_p10 }
 0x14d   : > { %643 = dma.done.wait (!%p469_p1), %s343_s16, 128  }
 0x14e   : > { %645 = vsyncadd (!%p469_p1), %s343_s16, 4294967168  ;;  %s21_s14 = sadd.s32 1, %s668_s14   ;;  %s937_s9 = smov %s652_s10 }
 0x14f   : > { %p18_p2 = scmp.ge.s32.totalorder %s21_s14, 4   ;;  %s938_s10 = smov %s656_s11 }
 0x150   : > { %s939_s11 = smov %s744_s23  ;;  %s940_s12 = smov %s664_s13 }
 0x151   : > { %s941_s13 = smov %s943_s17  ;;  %20 = sbr.rel (!%p18_p2) target bundleno = 8 (0x8), region = 94 }
 0x158   :  { %348 = vsyncpa [#allocation4], 1 }
 0x159   :  { %350 = vsyncpa [#allocation4 + $0x1], 1 }
 0x15a   :  { %351 = vsyncpa [#allocation7], 1 }
 0x15b   :  { %353 = vsyncpa [#allocation7 + $0x1], 1 }
 0x15c   :  { %354 = vsyncpa [#allocation5], 1 }
 0x15d   :  { %356 = vsyncpa [#allocation5 + $0x1], 1 }

</bundles_post_ra>
